<compile_context>
chip_gen: v6e
topology: v6e:2x2x1
jax: 0.10.0
libtpu: 0.0.40
codegen_flags: <defaults>
</compile_context>

<pallas_src>
import math

import jax
import jax.numpy as jnp
from jax import lax
from jax.experimental import pallas as pl
from jax.experimental.pallas import tpu as pltpu


def _linear_embed_kernel(x_ref, w_ref, b_ref, o_ref, acc_ref):
    # x_ref:  (tm, tk) bf16  activations
    # w_ref:  (tn, tk) bf16  nn.Linear weight layout (dim_out, dim_in) -- not transposed
    # b_ref:  (1, tn)  f32   bias
    # o_ref:  (tm, tn) f32   output tile
    # acc_ref:(tm, tn) f32   VMEM accumulator, persists across the K grid axis
    k = pl.program_id(2)

    @pl.when(k == 0)
    def _():
        acc_ref[...] = jnp.zeros_like(acc_ref)

    # (tm, tk) . (tn, tk)^T -> (tm, tn), contracting the last dims of both.
    acc_ref[...] += lax.dot_general(
        x_ref[...],
        w_ref[...],
        dimension_numbers=(((1,), (1,)), ((), ())),
        preferred_element_type=jnp.float32,
    )

    @pl.when(k == pl.num_programs(2) - 1)
    def _():
        # Bias added once per output tile (finalize), not per K step.
        o_ref[...] = (acc_ref[...] + b_ref[...]).astype(o_ref.dtype)


def _round_up(x, m):
    return ((x + m - 1) // m) * m


def _pad2d(a, rows, cols):
    pr, pc = rows - a.shape[0], cols - a.shape[1]
    if pr == 0 and pc == 0:
        return a
    return jnp.pad(a, ((0, pr), (0, pc)))


def linear_embed(x, weight, bias, *, tm=None, tn=None, tk=None):
    """Pallas implementation of LinearEmbed.forward.

    Args:
      x:      (B, ...) float input; flattened row-major to (B, dim_in), matching
              torch's x.view(x.shape[0], -1).
      weight: (dim_out, dim_in) float (torch nn.Linear layout, NOT transposed).
      bias:   (dim_out,) float.
    Returns:
      (B, dim_out) float32.
    """
    B = x.shape[0]
    dim_in = math.prod(x.shape[1:])          # static python ints -> no device op
    dim_out, w_dim_in = weight.shape
    assert w_dim_in == dim_in, (w_dim_in, dim_in)

    x2d = x.reshape(B, dim_in)

    # Tile sizes: (8,128)-aligned; K-tile bounded so the bf16 weight block
    # (x2 double buffers) stays <= ~2 MiB -> fits comfortably on v5e/v6e/v7x VMEM.
    if tm is None:
        tm = min(256, _round_up(B, 8))
    if tn is None:
        tn = 256 if dim_out >= 256 else 128   # fill v6e/v7x MXU width when possible
    if tk is None:
        tk = min(2048, _round_up(dim_in, 128))

    M = _round_up(B, tm)
    N = _round_up(dim_out, tn)
    K = _round_up(dim_in, tk)

    # bf16 inputs, f32 accumulation; zero-padding on K contributes nothing.
    x_p = _pad2d(x2d.astype(jnp.bfloat16), M, K)
    w_p = _pad2d(weight.astype(jnp.bfloat16), N, K)
    b_p = _pad2d(bias.astype(jnp.float32).reshape(1, dim_out), 1, N)

    grid = (M // tm, N // tn, K // tk)

    cost = pl.CostEstimate(
        flops=2 * M * N * K,
        transcendentals=0,
        bytes_accessed=(M * K + N * K) * 2 + M * N * 4 + N * 4,
    )

    out = pl.pallas_call(
        _linear_embed_kernel,
        out_shape=jax.ShapeDtypeStruct((M, N), jnp.float32),
        grid=grid,
        in_specs=[
            pl.BlockSpec((tm, tk), lambda i, j, k: (i, k)),   # x tile
            pl.BlockSpec((tn, tk), lambda i, j, k: (j, k)),   # weight tile (untransposed)
            pl.BlockSpec((1, tn), lambda i, j, k: (0, j)),    # bias tile
        ],
        out_specs=pl.BlockSpec((tm, tn), lambda i, j, k: (i, j)),
        scratch_shapes=[pltpu.VMEM((tm, tn), jnp.float32)],
        compiler_params=pltpu.CompilerParams(
            dimension_semantics=("parallel", "parallel", "arbitrary"),
        ),
        cost_estimate=cost,
    )(x_p, w_p, b_p)

    return out[:B, :dim_out]


if __name__ == "__main__":
    # Module config: dim_in = C*H*W = 4*16*16 = 1024, dim_out = 128.
    B, C, H, W = 2, 4, 16, 16
    dim_in = C * H * W
    dim_out = 128

    key = jax.random.PRNGKey(0)
    kx, kw, kb = jax.random.split(key, 3)

    x = jax.random.normal(kx, (B, C, H, W), dtype=jnp.float32)

    # nn.Linear default init: U(-1/sqrt(dim_in), 1/sqrt(dim_in))
    bound = 1.0 / math.sqrt(dim_in)
    weight = jax.random.uniform(kw, (dim_out, dim_in), dtype=jnp.float32,
                                minval=-bound, maxval=bound)
    bias = jax.random.uniform(kb, (dim_out,), dtype=jnp.float32,
                              minval=-bound, maxval=bound)

    y = jax.jit(linear_embed)(x, weight, bias)
    y = jax.block_until_ready(y)

    # References: (a) bf16-input / f32-accumulate (what the kernel computes),
    #             (b) full-f32 (semantics of the original module).
    x2d = x.reshape(B, -1)
    y_ref_bf16 = jnp.dot(x2d.astype(jnp.bfloat16),
                         weight.astype(jnp.bfloat16).T,
                         preferred_element_type=jnp.float32) + bias
    y_ref_f32 = x2d @ weight.T + bias

    assert y.shape == (B, dim_out)
    assert jnp.allclose(y, y_ref_bf16, atol=1e-3, rtol=1e-3), \
        float(jnp.max(jnp.abs(y - y_ref_bf16)))
    assert jnp.allclose(y, y_ref_f32, atol=3e-2, rtol=3e-2), \
        float(jnp.max(jnp.abs(y - y_ref_f32)))

    print("KERNEL_OK")
</pallas_src>

<mosaic_0001>
module attributes {stable_mosaic.version = 11 : i64} {
  func.func @_linear_embed_kernel(%arg0: i32, %arg1: i32, %arg2: i32, %arg3: memref<8x1024xbf16, #tpu.memory_space<vmem>>, %arg4: memref<128x1024xbf16, #tpu.memory_space<vmem>>, %arg5: memref<1x128xf32, #tpu.memory_space<vmem>>, %arg6: memref<8x128xf32, #tpu.memory_space<vmem>>, %arg7: memref<8x128xf32, #tpu.memory_space<vmem>>) attributes {dimension_semantics = [#tpu.dimension_semantics<parallel>, #tpu.dimension_semantics<parallel>, #tpu.dimension_semantics<arbitrary>], iteration_bounds = array<i64: 1, 1, 1>, scalar_prefetch = 0 : i64, scratch_operands = 1 : i64, tpu.core_type = #tpu.core_type<tc>, window_params = [{transform_indices = @transform_0, window_bounds = array<i64: 8, 1024>}, {transform_indices = @transform_1, window_bounds = array<i64: 128, 1024>}, {transform_indices = @transform_2, window_bounds = array<i64: 1, 128>}, {transform_indices = @transform_3, window_bounds = array<i64: 8, 128>}]} {
    %c0_i32 = arith.constant 0 : i32
    %0 = arith.cmpi eq, %arg2, %c0_i32 : i32
    %1 = arith.extui %0 : i1 to i32
    %c0_i32_0 = arith.constant 0 : i32
    %2 = arith.cmpi ne, %1, %c0_i32_0 : i32
    scf.if %2 {
      %cst_10 = arith.constant 0.000000e+00 : f32
      %12 = vector.broadcast %cst_10 : f32 to vector<8x128xf32>
      %c0_11 = arith.constant 0 : index
      %c0_12 = arith.constant 0 : index
      %13 = vector.load %arg7[%c0_11, %c0_12] : memref<8x128xf32, #tpu.memory_space<vmem>>, vector<8x128xf32>
      tpu.vector_store %arg7[%c0_11, %c0_12], %12 {strides = array<i32>} : memref<8x128xf32, #tpu.memory_space<vmem>>, vector<8x128xf32>,
    } else {
    }
    %c0 = arith.constant 0 : index
    %c0_1 = arith.constant 0 : index
    %3 = vector.load %arg7[%c0, %c0_1] : memref<8x128xf32, #tpu.memory_space<vmem>>, vector<8x128xf32>
    %c0_2 = arith.constant 0 : index
    %c0_3 = arith.constant 0 : index
    %4 = vector.load %arg3[%c0_2, %c0_3] : memref<8x1024xbf16, #tpu.memory_space<vmem>>, vector<8x1024xbf16>
    %c0_4 = arith.constant 0 : index
    %c0_5 = arith.constant 0 : index
    %5 = vector.load %arg4[%c0_4, %c0_5] : memref<128x1024xbf16, #tpu.memory_space<vmem>>, vector<128x1024xbf16>
    %cst = arith.constant dense<0.000000e+00> : vector<8x128xf32>
    %6 = tpu.matmul %4, %5, %cst {dimension_numbers = #tpu.dot_dimension_numbers<[1], [1], [0], [0], [0, 0, 1, 0], [], []>} : vector<8x1024xbf16>, vector<128x1024xbf16>, vector<8x128xf32> -> vector<8x128xf32>
    %7 = arith.addf %3, %6 : vector<8x128xf32>
    %c0_6 = arith.constant 0 : index
    %c0_7 = arith.constant 0 : index
    %8 = vector.load %arg7[%c0_6, %c0_7] : memref<8x128xf32, #tpu.memory_space<vmem>>, vector<8x128xf32>
    tpu.vector_store %arg7[%c0_6, %c0_7], %7 {strides = array<i32>} : memref<8x128xf32, #tpu.memory_space<vmem>>, vector<8x128xf32>,
    %c0_i32_8 = arith.constant 0 : i32
    %9 = arith.cmpi eq, %arg2, %c0_i32_8 : i32
    %10 = arith.extui %9 : i1 to i32
    %c0_i32_9 = arith.constant 0 : i32
    %11 = arith.cmpi ne, %10, %c0_i32_9 : i32
    scf.if %11 {
      %c0_10 = arith.constant 0 : index
      %c0_11 = arith.constant 0 : index
      %12 = vector.load %arg7[%c0_10, %c0_11] : memref<8x128xf32, #tpu.memory_space<vmem>>, vector<8x128xf32>
      %c0_12 = arith.constant 0 : index
      %c0_13 = arith.constant 0 : index
      %13 = vector.load %arg5[%c0_12, %c0_13] : memref<1x128xf32, #tpu.memory_space<vmem>>, vector<1x128xf32>
      %14 = vector.broadcast %13 : vector<1x128xf32> to vector<8x128xf32>
      %15 = arith.addf %12, %14 : vector<8x128xf32>
      %c0_14 = arith.constant 0 : index
      %c0_15 = arith.constant 0 : index
      %16 = vector.load %arg6[%c0_14, %c0_15] : memref<8x128xf32, #tpu.memory_space<vmem>>, vector<8x128xf32>
      tpu.vector_store %arg6[%c0_14, %c0_15], %15 {strides = array<i32>} : memref<8x128xf32, #tpu.memory_space<vmem>>, vector<8x128xf32>,
    } else {
    }
    return
  }
  func.func @transform_0(%arg0: i32, %arg1: i32, %arg2: i32) -> (i32, i32) {
    %c0_i32 = arith.constant 0 : i32
    return %arg0, %arg2 : i32, i32
  }
  func.func @transform_1(%arg0: i32, %arg1: i32, %arg2: i32) -> (i32, i32) {
    %c0_i32 = arith.constant 0 : i32
    return %arg1, %arg2 : i32, i32
  }
  func.func @transform_2(%arg0: i32, %arg1: i32, %arg2: i32) -> (i32, i32) {
    %c0_i32 = arith.constant 0 : i32
    %c0_i32_0 = arith.constant 0 : i32
    return %c0_i32, %arg1 : i32, i32
  }
  func.func @transform_3(%arg0: i32, %arg1: i32, %arg2: i32) -> (i32, i32) {
    %c0_i32 = arith.constant 0 : i32
    return %arg0, %arg1 : i32, i32
  }
}

</mosaic_0001>

<bundles_post_ra>
// kernel: linear_embed.1
= control target key start
LH: loop header
LB: loop body
LE: loop exit
PB: predicated region body
PF: predicated region fallthrough
CT: control target
= control target key end

     0   :  { %s951_s1 = inlined_call_operand.vmem [shape: bf16[128,1024], index: 1, kind: input, shape index: {}]   ;;  %s952_s0 = inlined_call_operand.vmem [shape: bf16[8,1024], index: 0, kind: input, shape index: {}]   ;;  %s953_s2 = inlined_call_operand.vmem [shape: f32[1,128], index: 2, kind: input, shape index: {}]   ;;  %s954_s3 = inlined_call_operand.vmem [shape: f32[8,128], index: 3, kind: output, shape index: {}]  }
   0x1   :  { %v81_v0 = vld [vmem:[%s951_s1 + $0x1c0] sm:$0xff]  ;;  %v82_v2 = vld [vmem:[%s951_s1 + $0x1c8] sm:$0xff] }
   0x2   :  { %v85_v1 = vld [vmem:[%s951_s1 + $0x1e0] sm:$0xff]  ;;  %v86_v4 = vld [vmem:[%s951_s1 + $0x1e8] sm:$0xff] }
   0x3   :  { %v681_v3 = vcombine.high %v81_v0, %v85_v1  ;;  %v680_v5 = vcombine.low %v81_v0, %v85_v1  ;;  %v73_v6 = vld [vmem:[%s951_s1 + $0x180] sm:$0xff]  ;;  %v683_v8 = vcombine.high %v82_v2, %v86_v4  ;;  %v682_v9 = vcombine.low %v82_v2, %v86_v4  ;;  %v74_v11 = vld [vmem:[%s951_s1 + $0x188] sm:$0xff]  ;;  %v83_v2 = vld [vmem:[%s951_s1 + $0x1d0] sm:$0xff] }
   0x4   :  { %v77_v7 = vld [vmem:[%s951_s1 + $0x1a0] sm:$0xff]  ;;  %v78_v12 = vld [vmem:[%s951_s1 + $0x1a8] sm:$0xff]  ;;  %v84_v4 = vld [vmem:[%s951_s1 + $0x1d8] sm:$0xff] }
   0x5   :  { %v673_v10 = vcombine.high %v73_v6, %v77_v7  ;;  %437 = vmatprep.subr.bf16.mxu0 %v681_v3  ;;  %v675_v13 = vcombine.high %v74_v11, %v78_v12  ;;  %477 = vmatprep.subr.bf16.mxu1 %v683_v8  ;;  %v65_v14 = vld [vmem:[%s951_s1 + $0x140] sm:$0xff]  ;;  %v66_v16 = vld [vmem:[%s951_s1 + $0x148] sm:$0xff]  ;;  %v672_v18 = vcombine.low %v73_v6, %v77_v7  ;;  %v87_v3 = vld [vmem:[%s951_s1 + $0x1f0] sm:$0xff] }
   0x6   :  { %438 = vmatpush1.bf16.xpose.msra.mxu0 %v680_v5  ;;  %478 = vmatpush1.bf16.xpose.msra.mxu1 %v682_v9  ;;  %v69_v15 = vld [vmem:[%s951_s1 + $0x160] sm:$0xff]  ;;  %v70_v17 = vld [vmem:[%s951_s1 + $0x168] sm:$0xff]  ;;  %v674_v19 = vcombine.low %v74_v11, %v78_v12  ;;  %v88_v5 = vld [vmem:[%s951_s1 + $0x1f8] sm:$0xff]  ;;  %v685_v8 = vcombine.high %v83_v2, %v87_v3 }
   0x7   :  { %439 = vmatprep.subr.bf16.mxu0 %v673_v10  ;;  %479 = vmatprep.subr.bf16.mxu1 %v675_v13  ;;  %v665_v20 = vcombine.high %v65_v14, %v69_v15  ;;  %v667_v21 = vcombine.high %v66_v16, %v70_v17  ;;  %v756_v22 = vld [vmem:[%s952_s0] sm:$0xff]  ;;  %v763_v24 = vld [vmem:[%s952_s0 + $0x8] sm:$0xff]  ;;  %v664_v30 = vcombine.low %v65_v14, %v69_v15  ;;  %v75_v10 = vld [vmem:[%s951_s1 + $0x190] sm:$0xff] }
   0x8   :  { %v617_v23 = vcombine.high %v756_v22, %v756_v22  ;;  %v619_v25 = vcombine.high %v763_v24, %v763_v24  ;;  %v57_v26 = vld [vmem:[%s951_s1 + $0x100] sm:$0xff]  ;;  %v58_v28 = vld [vmem:[%s951_s1 + $0x108] sm:$0xff]  ;;  %v666_v31 = vcombine.low %v66_v16, %v70_v17  ;;  %v687_v9 = vcombine.high %v84_v4, %v88_v5  ;;  %v79_v11 = vld [vmem:[%s951_s1 + $0x1b0] sm:$0xff] }
   0x9   :  { %v61_v27 = vld [vmem:[%s951_s1 + $0x120] sm:$0xff]  ;;  %v62_v29 = vld [vmem:[%s951_s1 + $0x128] sm:$0xff]  ;;  %v616_v12 = vcombine.low %v756_v22, %v756_v22  ;;  %v76_v13 = vld [vmem:[%s951_s1 + $0x198] sm:$0xff]  ;;  %v618_v16 = vcombine.low %v763_v24, %v763_v24  ;;  %v684_v17 = vcombine.low %v83_v2, %v87_v3 }
   0xa   :  { %469 = vmatprep.mubr.bf16.mxu0 %v617_v23  ;;  %509 = vmatprep.mubr.bf16.mxu1 %v619_v25  ;;  %v657_v32 = vcombine.high %v57_v26, %v61_v27  ;;  %v659_v33 = vcombine.high %v58_v28, %v62_v29  ;;  %v49_v34 = vld [vmem:[%s951_s1 + $0xc0] sm:$0xff]  ;;  %v50_v36 = vld [vmem:[%s951_s1 + $0xc8] sm:$0xff]  ;;  %v656_v38 = vcombine.low %v57_v26, %v61_v27  ;;  %v80_v14 = vld [vmem:[%s951_s1 + $0x1b8] sm:$0xff] }
   0xb   :  { %v53_v35 = vld [vmem:[%s951_s1 + $0xe0] sm:$0xff]  ;;  %v54_v37 = vld [vmem:[%s951_s1 + $0xe8] sm:$0xff]  ;;  %v658_v39 = vcombine.low %v58_v28, %v62_v29  ;;  %v856_v15 = vld [vmem:[%s952_s0 + $0x10] sm:$0xff]  ;;  %v676_v28 = vcombine.low %v75_v10, %v79_v11  ;;  %v678_v29 = vcombine.low %v76_v13, %v80_v14 }
   0xc   :  { %v649_v40 = vcombine.high %v49_v34, %v53_v35  ;;  %v651_v41 = vcombine.high %v50_v36, %v54_v37  ;;  %v41_v42 = vld [vmem:[%s951_s1 + $0x80] sm:$0xff]  ;;  %v42_v44 = vld [vmem:[%s951_s1 + $0x88] sm:$0xff]  ;;  %v648_v46 = vcombine.low %v49_v34, %v53_v35  ;;  %v650_v47 = vcombine.low %v50_v36, %v54_v37  ;;  %v67_v24 = vld [vmem:[%s951_s1 + $0x150] sm:$0xff] }
   0xd   :  { %v45_v43 = vld [vmem:[%s951_s1 + $0xa0] sm:$0xff]  ;;  %v46_v45 = vld [vmem:[%s951_s1 + $0xa8] sm:$0xff]  ;;  %v621_v22 = vcombine.high %v856_v15, %v856_v15  ;;  %v71_v25 = vld [vmem:[%s951_s1 + $0x170] sm:$0xff] }
   0xe   :  { %440 = vmatpush1.bf16.xpose.msra.mxu0 %v672_v18  ;;  %480 = vmatpush1.bf16.xpose.msra.mxu1 %v674_v19  ;;  %v641_v48 = vcombine.high %v41_v42, %v45_v43  ;;  %v643_v49 = vcombine.high %v42_v44, %v46_v45  ;;  %v33_v50 = vld [vmem:[%s951_s1 + $0x40] sm:$0xff]  ;;  %v34_v52 = vld [vmem:[%s951_s1 + $0x48] sm:$0xff]  ;;  %v640_v54 = vcombine.low %v41_v42, %v45_v43  ;;  %v863_v18 = vld [vmem:[%s952_s0 + $0x18] sm:$0xff] }
   0xf   :  { %441 = vmatprep.subr.bf16.mxu0 %v665_v20  ;;  %481 = vmatprep.subr.bf16.mxu1 %v667_v21  ;;  %v37_v51 = vld [vmem:[%s951_s1 + $0x60] sm:$0xff]  ;;  %v38_v53 = vld [vmem:[%s951_s1 + $0x68] sm:$0xff]  ;;  %v642_v55 = vcombine.low %v42_v44, %v46_v45  ;;  %v686_v19 = vcombine.low %v84_v4, %v88_v5  ;;  %v677_v20 = vcombine.high %v75_v10, %v79_v11  ;;  %v68_v26 = vld [vmem:[%s951_s1 + $0x158] sm:$0xff] }
  0x10   :  { %v633_v56 = vcombine.high %v33_v50, %v37_v51  ;;  %v635_v57 = vcombine.high %v34_v52, %v38_v53  ;;  %v25_v58 = vld [vmem:[%s951_s1] sm:$0xff]  ;;  %v26_v60 = vld [vmem:[%s951_s1 + $0x8] sm:$0xff]  ;;  %v632_v62 = vcombine.low %v33_v50, %v37_v51  ;;  %v634_v63 = vcombine.low %v34_v52, %v38_v53  ;;  %v72_v27 = vld [vmem:[%s951_s1 + $0x178] sm:$0xff] }
  0x11   :  { %v29_v59 = vld [vmem:[%s951_s1 + $0x20] sm:$0xff]  ;;  %v30_v61 = vld [vmem:[%s951_s1 + $0x28] sm:$0xff]  ;;  %v679_v21 = vcombine.high %v76_v13, %v80_v14  ;;  %v623_v23 = vcombine.high %v863_v18, %v863_v18  ;;  %v60_v34 = vld [vmem:[%s951_s1 + $0x118] sm:$0xff]  ;;  %v668_v36 = vcombine.low %v67_v24, %v71_v25  ;;  %v670_v37 = vcombine.low %v68_v26, %v72_v27 }
  0x12   :  { %v625_v0 = vcombine.high %v25_v58, %v29_v59  ;;  %v627_v1 = vcombine.high %v26_v60, %v30_v61  ;;  %v624_v6 = vcombine.low %v25_v58, %v29_v59  ;;  %v626_v7 = vcombine.low %v26_v60, %v30_v61  ;;  %v64_v35 = vld [vmem:[%s951_s1 + $0x138] sm:$0xff] }
  0x13   :  { %v52_v42 = vld [vmem:[%s951_s1 + $0xd8] sm:$0xff]  ;;  %v662_v45 = vcombine.low %v60_v34, %v64_v35  ;;  %v620_v10 = vcombine.low %v856_v15, %v856_v15  ;;  %v622_v11 = vcombine.low %v863_v18, %v863_v18  ;;  %v688_v15 = vld [vmem:[%s953_s2] ss:$0 sm:$0xff] }
  0x14   :  { %v56_v43 = vld [vmem:[%s951_s1 + $0xf8] sm:$0xff] }
  0x15   :  { %v44_v50 = vld [vmem:[%s951_s1 + $0x98] sm:$0xff]  ;;  %v654_v53 = vcombine.low %v52_v42, %v56_v43 }
  0x16   :  { %442 = vmatpush1.bf16.xpose.msra.mxu0 %v664_v30  ;;  %482 = vmatpush1.bf16.xpose.msra.mxu1 %v666_v31  ;;  %v669_v30 = vcombine.high %v67_v24, %v71_v25  ;;  %v671_v31 = vcombine.high %v68_v26, %v72_v27  ;;  %v48_v51 = vld [vmem:[%s951_s1 + $0xb8] sm:$0xff] }
  0x17   :  { %443 = vmatprep.subr.bf16.mxu0 %v657_v32  ;;  %483 = vmatprep.subr.bf16.mxu1 %v659_v33  ;;  %v59_v32 = vld [vmem:[%s951_s1 + $0x110] sm:$0xff]  ;;  %v36_v58 = vld [vmem:[%s951_s1 + $0x58] sm:$0xff]  ;;  %v646_v61 = vcombine.low %v44_v50, %v48_v51 }
  0x18   :  { %v63_v33 = vld [vmem:[%s951_s1 + $0x130] sm:$0xff]  ;;  %v40_v59 = vld [vmem:[%s951_s1 + $0x78] sm:$0xff] }
  0x19   :  { %v660_v44 = vcombine.low %v59_v32, %v63_v33  ;;  %v28_v2 = vld [vmem:[%s951_s1 + $0x18] sm:$0xff]  ;;  %v638_v5 = vcombine.low %v36_v58, %v40_v59 }
  0x1a   :  { %v32_v3 = vld [vmem:[%s951_s1 + $0x38] sm:$0xff] }
  0x1e   :  { %444 = vmatpush1.bf16.xpose.msra.mxu0 %v656_v38  ;;  %484 = vmatpush1.bf16.xpose.msra.mxu1 %v658_v39  ;;  %v661_v38 = vcombine.high %v59_v32, %v63_v33  ;;  %v663_v39 = vcombine.high %v60_v34, %v64_v35 }
  0x1f   :  { %445 = vmatprep.subr.bf16.mxu0 %v649_v40  ;;  %485 = vmatprep.subr.bf16.mxu1 %v651_v41  ;;  %v51_v40 = vld [vmem:[%s951_s1 + $0xd0] sm:$0xff] }
  0x20   :  { %v55_v41 = vld [vmem:[%s951_s1 + $0xf0] sm:$0xff] }
  0x21   :  { %v652_v52 = vcombine.low %v51_v40, %v55_v41 }
  0x26   :  { %446 = vmatpush1.bf16.xpose.msra.mxu0 %v648_v46  ;;  %486 = vmatpush1.bf16.xpose.msra.mxu1 %v650_v47  ;;  %v653_v46 = vcombine.high %v51_v40, %v55_v41  ;;  %v655_v47 = vcombine.high %v52_v42, %v56_v43 }
  0x27   :  { %447 = vmatprep.subr.bf16.mxu0 %v641_v48  ;;  %487 = vmatprep.subr.bf16.mxu1 %v643_v49  ;;  %v43_v48 = vld [vmem:[%s951_s1 + $0x90] sm:$0xff] }
  0x28   :  { %v47_v49 = vld [vmem:[%s951_s1 + $0xb0] sm:$0xff] }
  0x29   :  { %v644_v60 = vcombine.low %v43_v48, %v47_v49 }
  0x2e   :  { %448 = vmatpush1.bf16.xpose.msra.mxu0 %v640_v54  ;;  %488 = vmatpush1.bf16.xpose.msra.mxu1 %v642_v55  ;;  %v645_v54 = vcombine.high %v43_v48, %v47_v49  ;;  %v647_v55 = vcombine.high %v44_v50, %v48_v51 }
  0x2f   :  { %449 = vmatprep.subr.bf16.mxu0 %v633_v56  ;;  %489 = vmatprep.subr.bf16.mxu1 %v635_v57  ;;  %v35_v56 = vld [vmem:[%s951_s1 + $0x50] sm:$0xff] }
  0x30   :  { %v39_v57 = vld [vmem:[%s951_s1 + $0x70] sm:$0xff] }
  0x31   :  { %v636_v4 = vcombine.low %v35_v56, %v39_v57 }
  0x36   :  { %450 = vmatpush1.bf16.xpose.msra.mxu0 %v632_v62  ;;  %490 = vmatpush1.bf16.xpose.msra.mxu1 %v634_v63  ;;  %v637_v62 = vcombine.high %v35_v56, %v39_v57  ;;  %v639_v63 = vcombine.high %v36_v58, %v40_v59 }
  0x37   :  { %451 = vmatprep.subr.bf16.mxu0 %v625_v0  ;;  %491 = vmatprep.subr.bf16.mxu1 %v627_v1  ;;  %v27_v0 = vld [vmem:[%s951_s1 + $0x10] sm:$0xff] }
  0x38   :  { %v31_v1 = vld [vmem:[%s951_s1 + $0x30] sm:$0xff] }
  0x3e   :  { %452 = vmatpush1.bf16.xpose.msra.mxu0 %v624_v6  ;;  %492 = vmatpush1.bf16.xpose.msra.mxu1 %v626_v7  ;;  %v629_v6 = vcombine.high %v27_v0, %v31_v1  ;;  %v631_v7 = vcombine.high %v28_v2, %v32_v3 }
  0x3f   :  { %517 = vmatprep.subr.bf16.mxu0 %v685_v8  ;;  %557 = vmatprep.subr.bf16.mxu1 %v687_v9  ;;  %v628_v8 = vcombine.low %v27_v0, %v31_v1  ;;  %v630_v9 = vcombine.low %v28_v2, %v32_v3 }
  0x45   :  { %470 = vmatmul.mubr.bf16.vlgmr.msra.gmra.mxu0 %v616_v12  ;;  %510 = vmatmul.mubr.bf16.vlgmr.msra.gmra.mxu1 %v618_v16 }
  0x46   :  { %518 = vmatpush1.bf16.xpose.msra.mxu0 %v684_v17  ;;  %558 = vmatpush1.bf16.xpose.msra.mxu1 %v686_v19 }
  0x47   :  { %519 = vmatprep.subr.bf16.mxu0 %v677_v20  ;;  %559 = vmatprep.subr.bf16.mxu1 %v679_v21 }
  0x48   :  { %549 = vmatprep.mubr.bf16.mxu0 %v621_v22  ;;  %589 = vmatprep.mubr.bf16.mxu1 %v623_v23 }
  0x4e   :  { %520 = vmatpush1.bf16.xpose.msra.mxu0 %v676_v28  ;;  %560 = vmatpush1.bf16.xpose.msra.mxu1 %v678_v29 }
  0x4f   :  { %521 = vmatprep.subr.bf16.mxu0 %v669_v30  ;;  %561 = vmatprep.subr.bf16.mxu1 %v671_v31 }
  0x56   :  { %522 = vmatpush1.bf16.xpose.msra.mxu0 %v668_v36  ;;  %562 = vmatpush1.bf16.xpose.msra.mxu1 %v670_v37 }
  0x57   :  { %523 = vmatprep.subr.bf16.mxu0 %v661_v38  ;;  %563 = vmatprep.subr.bf16.mxu1 %v663_v39 }
  0x5e   :  { %524 = vmatpush1.bf16.xpose.msra.mxu0 %v660_v44  ;;  %564 = vmatpush1.bf16.xpose.msra.mxu1 %v662_v45 }
  0x5f   :  { %525 = vmatprep.subr.bf16.mxu0 %v653_v46  ;;  %565 = vmatprep.subr.bf16.mxu1 %v655_v47 }
  0x66   :  { %526 = vmatpush1.bf16.xpose.msra.mxu0 %v652_v52  ;;  %566 = vmatpush1.bf16.xpose.msra.mxu1 %v654_v53 }
  0x67   :  { %527 = vmatprep.subr.bf16.mxu0 %v645_v54  ;;  %567 = vmatprep.subr.bf16.mxu1 %v647_v55 }
  0x6e   :  { %528 = vmatpush1.bf16.xpose.msra.mxu0 %v644_v60  ;;  %568 = vmatpush1.bf16.xpose.msra.mxu1 %v646_v61 }
  0x6f   :  { %529 = vmatprep.subr.bf16.mxu0 %v637_v62  ;;  %569 = vmatprep.subr.bf16.mxu1 %v639_v63 }
  0x76   :  { %530 = vmatpush1.bf16.xpose.msra.mxu0 %v636_v4  ;;  %570 = vmatpush1.bf16.xpose.msra.mxu1 %v638_v5 }
  0x77   :  { %531 = vmatprep.subr.bf16.mxu0 %v629_v6  ;;  %571 = vmatprep.subr.bf16.mxu1 %v631_v7 }
  0x7e   :  { %532 = vmatpush1.bf16.xpose.msra.mxu0 %v628_v8  ;;  %572 = vmatpush1.bf16.xpose.msra.mxu1 %v630_v9 }
  0x85   :  { %550 = vmatmul.mubr.bf16.vlgmr.msra.gmra.mxu0 %v620_v10  ;;  %590 = vmatmul.mubr.bf16.vlgmr.msra.gmra.mxu1 %v622_v11 }
 0x105   :  { %v471_v12 = vpop.f32.mrf.mxu0  ;;  %v511_v13 = vpop.f32.mrf.mxu1 }
 0x106   :  { %v512_v22 = vadd.f32 %v511_v13, %v471_v12 }
 0x107   :  { %v473_v14 = vpop.f32.mrf.mxu0  ;;  %v513_v16 = vpop.f32.mrf.mxu1 }
 0x109   :  { %v474_v17 = vpop.f32.mrf.mxu0  ;;  %v514_v19 = vpop.f32.mrf.mxu1 }
 0x10b   :  { %v475_v20 = vpop.f32.mrf.mxu0  ;;  %v515_v21 = vpop.f32.mrf.mxu1 }
 0x145   :  { %v551_v23 = vpop.f32.mrf.mxu0  ;;  %v591_v25 = vpop.f32.mrf.mxu1 }
 0x146   :  { %v552_v24 = vadd.f32 %v551_v23, %v512_v22 }
 0x147   :  { %v553_v26 = vpop.f32.mrf.mxu0  ;;  %v593_v27 = vpop.f32.mrf.mxu1 }
 0x148   :  { %v592_v18 = vadd.f32 %v591_v25, %v552_v24 }
 0x149   :  { %v554_v28 = vpop.f32.mrf.mxu0  ;;  %v594_v30 = vpop.f32.mrf.mxu1 }
 0x14a   :  { %v610_v29 = vadd.f32 %v688_v15, %v592_v18 }
 0x14b   :  { %v555_v31 = vpop.f32.mrf.mxu0  ;;  %v595_v32 = vpop.f32.mrf.mxu1 }
 0x14c   :  { %611 = vst [vmem:[%s954_s3] sm:$0xff] %v610_v29 }

</bundles_post_ra>
